<compile_context>
chip_gen: v7x
topology: tpu7x:2x2x1
jax: 0.10.0
libtpu: 0.0.40
codegen_flags: <defaults>
</compile_context>

<pallas_src>
import jax
import jax.numpy as jnp
from jax.experimental import pallas as pl
from jax.experimental.pallas import tpu as pltpu


def _round_up(x, m):
    return ((x + m - 1) // m) * m


def _disc_kernel(xs_ref, xa_ref,
                 w1s_ref, b1s_ref, w1a_ref, b1a_ref,
                 w2s_ref, b2s_ref, w2a_ref, b2a_ref,
                 w3s_ref, w3a_ref, b3_ref, o_ref):
    """Both 3-layer MLP branches for one batch tile (weights VMEM-resident)."""
    f32 = jnp.float32

    # Layer 1 + ReLU (per branch).
    hs = jnp.dot(xs_ref[...], w1s_ref[...], preferred_element_type=f32)
    hs = jnp.maximum(hs + b1s_ref[...], 0.0)
    ha = jnp.dot(xa_ref[...], w1a_ref[...], preferred_element_type=f32)
    ha = jnp.maximum(ha + b1a_ref[...], 0.0)

    # Layer 2 + ReLU (per branch).
    hs = jnp.dot(hs.astype(w2s_ref.dtype), w2s_ref[...], preferred_element_type=f32)
    hs = jnp.maximum(hs + b2s_ref[...], 0.0)
    ha = jnp.dot(ha.astype(w2a_ref.dtype), w2a_ref[...], preferred_element_type=f32)
    ha = jnp.maximum(ha + b2a_ref[...], 0.0)

    # Layer 3: each branch's w3 slab already places its logits in its lane
    # window, so a single VPU add yields the full lane-dense output slab.
    out = (jnp.dot(hs.astype(w3s_ref.dtype), w3s_ref[...], preferred_element_type=f32)
           + jnp.dot(ha.astype(w3a_ref.dtype), w3a_ref[...], preferred_element_type=f32)
           + b3_ref[...])
    o_ref[...] = out.astype(o_ref.dtype)


def _fused_forward(state_p, action_p, packed, *, tb, slab, out_dtype):
    """One pallas_call for both branches, gridded over the (padded) batch."""
    (w1s, b1s, w1a, b1a, w2s, b2s, w2a, b2a, w3s, w3a, b3) = packed
    b_pad = state_p.shape[0]
    grid = (b_pad // tb,)

    # Weights/biases stay VMEM-resident across all batch tiles.
    resident = lambda a: pl.BlockSpec(a.shape, lambda i: (0, 0))

    return pl.pallas_call(
        _disc_kernel,
        out_shape=jax.ShapeDtypeStruct((b_pad, slab), out_dtype),
        grid=grid,
        in_specs=[
            pl.BlockSpec((tb, state_p.shape[1]), lambda i: (i, 0)),
            pl.BlockSpec((tb, action_p.shape[1]), lambda i: (i, 0)),
            resident(w1s), resident(b1s), resident(w1a), resident(b1a),
            resident(w2s), resident(b2s), resident(w2a), resident(b2a),
            resident(w3s), resident(w3a), resident(b3),
        ],
        out_specs=pl.BlockSpec((tb, slab), lambda i: (i, 0)),
        compiler_params=pltpu.CompilerParams(
            dimension_semantics=("parallel",),   # shard batch tiles across TCs (v7x)
            vmem_limit_bytes=32 * 1024 * 1024,   # safe on v5e/v6e/v7x scoped VMEM
        ),
    )(state_p, action_p, w1s, b1s, w1a, b1a, w2s, b2s, w2a, b2a, w3s, w3a, b3)


def _xavier(key, fan_in, fan_out):
    limit = jnp.sqrt(6.0 / (fan_in + fan_out))
    return jax.random.uniform(key, (fan_in, fan_out), minval=-limit, maxval=limit,
                              dtype=jnp.float32)


def init_branch_params(key, in_dim, hidden_size, out_dim):
    """Xavier-uniform weights, zero biases (mirrors weights_init_)."""
    k1, k2, k3 = jax.random.split(key, 3)
    return dict(
        w1=_xavier(k1, in_dim, hidden_size), b1=jnp.zeros((hidden_size,), jnp.float32),
        w2=_xavier(k2, hidden_size, hidden_size), b2=jnp.zeros((hidden_size,), jnp.float32),
        w3=_xavier(k3, hidden_size, out_dim), b3=jnp.zeros((out_dim,), jnp.float32),
    )


def _pick_tiles(batch, cap=512):
    """Sublane-aligned batch tile; >=2 tiles once batch>=16 (v7x megacore)."""
    b8 = _round_up(max(batch, 1), 8)
    n_tiles = max(pl.cdiv(b8, cap), 2 if b8 >= 16 else 1)
    tb = _round_up(pl.cdiv(b8, n_tiles), 8)
    return tb, tb * n_tiles


class DiscriminatorPallas:
    def __init__(self, num_species, state_dim, action_dim, hidden_size, n_hidden, key,
                 matmul_dtype=jnp.float32):
        # n_hidden is unused in the reference forward (fixed 2-hidden-layer stacks).
        # matmul_dtype=jnp.bfloat16 halves HBM/VMEM traffic (x, weights, output
        # slab) on v6e/v7x while the MXU still accumulates in fp32.
        self.num_species = num_species
        self.state_dim = state_dim
        self.action_dim = action_dim
        self.hidden_size = hidden_size
        self.matmul_dtype = matmul_dtype

        # Lane-dense hidden width per branch and output slab layout.
        self._hid = _round_up(hidden_size, 128)
        self._half = 64 if num_species <= 64 else _round_up(num_species, 128)
        self._slab = 2 * self._half   # multiple of 128 -> unmasked output stores

        ks, ka = jax.random.split(key, 2)
        self.state_params = init_branch_params(ks, state_dim, hidden_size, num_species)
        self.action_params = init_branch_params(ka, action_dim, hidden_size, num_species)
        self.packed = self._pack_params()

    def _pack_params(self):
        sp, ap = self.state_params, self.action_params
        H, O, Hh, half, slab = (self.hidden_size, self.num_species,
                                self._hid, self._half, self._slab)
        md = self.matmul_dtype

        def pad2(w, rows, cols):
            out = jnp.zeros((rows, cols), jnp.float32)
            return out.at[:w.shape[0], :w.shape[1]].set(w)

        w1s = pad2(sp["w1"], self.state_dim, Hh)
        w1a = pad2(ap["w1"], self.action_dim, Hh)
        b1s = pad2(sp["b1"][None, :], 1, Hh)
        b1a = pad2(ap["b1"][None, :], 1, Hh)
        w2s = pad2(sp["w2"], Hh, Hh)
        w2a = pad2(ap["w2"], Hh, Hh)
        b2s = pad2(sp["b2"][None, :], 1, Hh)
        b2a = pad2(ap["b2"][None, :], 1, Hh)

        # Layer 3 slabs place each branch's logits in its lane window:
        # state -> lanes [0:O], action -> lanes [half:half+O].
        w3s = jnp.zeros((Hh, slab), jnp.float32).at[:H, :O].set(sp["w3"])
        w3a = jnp.zeros((Hh, slab), jnp.float32).at[:H, half:half + O].set(ap["w3"])
        b3 = (jnp.zeros((1, slab), jnp.float32)
              .at[0, :O].set(sp["b3"])
              .at[0, half:half + O].set(ap["b3"]))

        # Biases stay fp32 (fp32 bias/ReLU math); weights go to matmul dtype.
        return (w1s.astype(md), b1s, w1a.astype(md), b1a,
                w2s.astype(md), b2s, w2a.astype(md), b2a,
                w3s.astype(md), w3a.astype(md), b3)

    def __call__(self, state, action):
        B = state.shape[0]
        tb, b_pad = _pick_tiles(B)

        state_p = state.astype(self.matmul_dtype)
        action_p = action.astype(self.matmul_dtype)
        if b_pad != B:
            state_p = jnp.pad(state_p, ((0, b_pad - B), (0, 0)))
            action_p = jnp.pad(action_p, ((0, b_pad - B), (0, 0)))

        out = _fused_forward(state_p, action_p, self.packed,
                             tb=tb, slab=self._slab, out_dtype=self.matmul_dtype)
        logits_state = out[:B, :self.num_species].astype(jnp.float32)
        logits_action = out[:B, self._half:self._half + self.num_species].astype(jnp.float32)
        return logits_state, logits_action


def _ref_branch(x, p):
    h = jnp.maximum(x @ p["w1"] + p["b1"], 0.0)
    h = jnp.maximum(h @ p["w2"] + p["b2"], 0.0)
    return h @ p["w3"] + p["b3"]


if __name__ == "__main__":
    key = jax.random.PRNGKey(0)
    k_param, k_state, k_action = jax.random.split(key, 3)

    batch = 2
    num_species = 4
    state_dim = 16
    action_dim = 8
    hidden_size = 32
    n_hidden = 2

    state = jax.random.normal(k_state, (batch, state_dim), dtype=jnp.float32)
    action = jax.random.normal(k_action, (batch, action_dim), dtype=jnp.float32)

    # --- fp32 path: tight check against pure-JAX reference ---
    disc = DiscriminatorPallas(num_species, state_dim, action_dim, hidden_size,
                               n_hidden, k_param)
    logits_state, logits_action = disc(state, action)
    jax.block_until_ready((logits_state, logits_action))

    ref_s = _ref_branch(state, disc.state_params)
    ref_a = _ref_branch(action, disc.action_params)
    assert logits_state.shape == (batch, num_species)
    assert logits_action.shape == (batch, num_species)
    assert jnp.allclose(logits_state, ref_s, atol=1e-4, rtol=1e-4), \
        float(jnp.max(jnp.abs(logits_state - ref_s)))
    assert jnp.allclose(logits_action, ref_a, atol=1e-4, rtol=1e-4), \
        float(jnp.max(jnp.abs(logits_action - ref_a)))

    # --- bf16 path: loose check (validates the bandwidth-optimized dtype) ---
    disc_bf16 = DiscriminatorPallas(num_species, state_dim, action_dim, hidden_size,
                                    n_hidden, k_param, matmul_dtype=jnp.bfloat16)
    ls_bf16, la_bf16 = disc_bf16(state, action)
    jax.block_until_ready((ls_bf16, la_bf16))
    assert jnp.allclose(ls_bf16, ref_s, atol=1e-1, rtol=1e-1)
    assert jnp.allclose(la_bf16, ref_a, atol=1e-1, rtol=1e-1)

    print("KERNEL_OK")
</pallas_src>

<mosaic_0001>
module attributes {stable_mosaic.version = 11 : i64} {
  func.func @_disc_kernel(%arg0: i32, %arg1: memref<8x16xf32, #tpu.memory_space<vmem>>, %arg2: memref<8x8xf32, #tpu.memory_space<vmem>>, %arg3: memref<16x128xf32, #tpu.memory_space<vmem>>, %arg4: memref<1x128xf32, #tpu.memory_space<vmem>>, %arg5: memref<8x128xf32, #tpu.memory_space<vmem>>, %arg6: memref<1x128xf32, #tpu.memory_space<vmem>>, %arg7: memref<128x128xf32, #tpu.memory_space<vmem>>, %arg8: memref<1x128xf32, #tpu.memory_space<vmem>>, %arg9: memref<128x128xf32, #tpu.memory_space<vmem>>, %arg10: memref<1x128xf32, #tpu.memory_space<vmem>>, %arg11: memref<128x128xf32, #tpu.memory_space<vmem>>, %arg12: memref<128x128xf32, #tpu.memory_space<vmem>>, %arg13: memref<1x128xf32, #tpu.memory_space<vmem>>, %arg14: memref<8x128xf32, #tpu.memory_space<vmem>>) attributes {dimension_semantics = [#tpu.dimension_semantics<parallel>], iteration_bounds = array<i64: 1>, scalar_prefetch = 0 : i64, scratch_operands = 0 : i64, tpu.core_type = #tpu.core_type<tc>, window_params = [{transform_indices = @transform_0, window_bounds = array<i64: 8, 16>}, {transform_indices = @transform_1, window_bounds = array<i64: 8, 8>}, {pipeline_mode = #tpu.pipeline_mode<synchronous>, transform_indices = @transform_2, window_bounds = array<i64: 16, 128>}, {pipeline_mode = #tpu.pipeline_mode<synchronous>, transform_indices = @transform_3, window_bounds = array<i64: 1, 128>}, {pipeline_mode = #tpu.pipeline_mode<synchronous>, transform_indices = @transform_4, window_bounds = array<i64: 8, 128>}, {pipeline_mode = #tpu.pipeline_mode<synchronous>, transform_indices = @transform_5, window_bounds = array<i64: 1, 128>}, {pipeline_mode = #tpu.pipeline_mode<synchronous>, transform_indices = @transform_6, window_bounds = array<i64: 128, 128>}, {pipeline_mode = #tpu.pipeline_mode<synchronous>, transform_indices = @transform_7, window_bounds = array<i64: 1, 128>}, {pipeline_mode = #tpu.pipeline_mode<synchronous>, transform_indices = @transform_8, window_bounds = array<i64: 128, 128>}, {pipeline_mode = #tpu.pipeline_mode<synchronous>, transform_indices = @transform_9, window_bounds = array<i64: 1, 128>}, {pipeline_mode = #tpu.pipeline_mode<synchronous>, transform_indices = @transform_10, window_bounds = array<i64: 128, 128>}, {pipeline_mode = #tpu.pipeline_mode<synchronous>, transform_indices = @transform_11, window_bounds = array<i64: 128, 128>}, {pipeline_mode = #tpu.pipeline_mode<synchronous>, transform_indices = @transform_12, window_bounds = array<i64: 1, 128>}, {transform_indices = @transform_13, window_bounds = array<i64: 8, 128>}]} {
    %c0 = arith.constant 0 : index
    %c0_0 = arith.constant 0 : index
    %0 = vector.load %arg1[%c0, %c0_0] : memref<8x16xf32, #tpu.memory_space<vmem>>, vector<8x16xf32>
    %c0_1 = arith.constant 0 : index
    %c0_2 = arith.constant 0 : index
    %1 = vector.load %arg3[%c0_1, %c0_2] : memref<16x128xf32, #tpu.memory_space<vmem>>, vector<16x128xf32>
    %cst = arith.constant dense<0.000000e+00> : vector<8x128xf32>
    %2 = tpu.matmul %0, %1, %cst {dimension_numbers = #tpu.dot_dimension_numbers<[1], [0], [0], [1], [0, 0, 1, 1], [], []>} : vector<8x16xf32>, vector<16x128xf32>, vector<8x128xf32> -> vector<8x128xf32>
    %c0_3 = arith.constant 0 : index
    %c0_4 = arith.constant 0 : index
    %3 = vector.load %arg4[%c0_3, %c0_4] : memref<1x128xf32, #tpu.memory_space<vmem>>, vector<1x128xf32>
    %4 = vector.broadcast %3 : vector<1x128xf32> to vector<8x128xf32>
    %5 = arith.addf %2, %4 : vector<8x128xf32>
    %cst_5 = arith.constant 0.000000e+00 : f32
    %6 = vector.broadcast %cst_5 : f32 to vector<8x128xf32>
    %7 = arith.maximumf %5, %6 : vector<8x128xf32>
    %c0_6 = arith.constant 0 : index
    %c0_7 = arith.constant 0 : index
    %8 = vector.load %arg2[%c0_6, %c0_7] : memref<8x8xf32, #tpu.memory_space<vmem>>, vector<8x8xf32>
    %c0_8 = arith.constant 0 : index
    %c0_9 = arith.constant 0 : index
    %9 = vector.load %arg5[%c0_8, %c0_9] : memref<8x128xf32, #tpu.memory_space<vmem>>, vector<8x128xf32>
    %cst_10 = arith.constant dense<0.000000e+00> : vector<8x128xf32>
    %10 = tpu.matmul %8, %9, %cst_10 {dimension_numbers = #tpu.dot_dimension_numbers<[1], [0], [0], [1], [0, 0, 1, 1], [], []>} : vector<8x8xf32>, vector<8x128xf32>, vector<8x128xf32> -> vector<8x128xf32>
    %c0_11 = arith.constant 0 : index
    %c0_12 = arith.constant 0 : index
    %11 = vector.load %arg6[%c0_11, %c0_12] : memref<1x128xf32, #tpu.memory_space<vmem>>, vector<1x128xf32>
    %12 = vector.broadcast %11 : vector<1x128xf32> to vector<8x128xf32>
    %13 = arith.addf %10, %12 : vector<8x128xf32>
    %cst_13 = arith.constant 0.000000e+00 : f32
    %14 = vector.broadcast %cst_13 : f32 to vector<8x128xf32>
    %15 = arith.maximumf %13, %14 : vector<8x128xf32>
    %c0_14 = arith.constant 0 : index
    %c0_15 = arith.constant 0 : index
    %16 = vector.load %arg7[%c0_14, %c0_15] : memref<128x128xf32, #tpu.memory_space<vmem>>, vector<128x128xf32>
    %cst_16 = arith.constant dense<0.000000e+00> : vector<8x128xf32>
    %17 = tpu.matmul %7, %16, %cst_16 {dimension_numbers = #tpu.dot_dimension_numbers<[1], [0], [0], [1], [0, 0, 1, 1], [], []>} : vector<8x128xf32>, vector<128x128xf32>, vector<8x128xf32> -> vector<8x128xf32>
    %c0_17 = arith.constant 0 : index
    %c0_18 = arith.constant 0 : index
    %18 = vector.load %arg8[%c0_17, %c0_18] : memref<1x128xf32, #tpu.memory_space<vmem>>, vector<1x128xf32>
    %19 = vector.broadcast %18 : vector<1x128xf32> to vector<8x128xf32>
    %20 = arith.addf %17, %19 : vector<8x128xf32>
    %cst_19 = arith.constant 0.000000e+00 : f32
    %21 = vector.broadcast %cst_19 : f32 to vector<8x128xf32>
    %22 = arith.maximumf %20, %21 : vector<8x128xf32>
    %c0_20 = arith.constant 0 : index
    %c0_21 = arith.constant 0 : index
    %23 = vector.load %arg9[%c0_20, %c0_21] : memref<128x128xf32, #tpu.memory_space<vmem>>, vector<128x128xf32>
    %cst_22 = arith.constant dense<0.000000e+00> : vector<8x128xf32>
    %24 = tpu.matmul %15, %23, %cst_22 {dimension_numbers = #tpu.dot_dimension_numbers<[1], [0], [0], [1], [0, 0, 1, 1], [], []>} : vector<8x128xf32>, vector<128x128xf32>, vector<8x128xf32> -> vector<8x128xf32>
    %c0_23 = arith.constant 0 : index
    %c0_24 = arith.constant 0 : index
    %25 = vector.load %arg10[%c0_23, %c0_24] : memref<1x128xf32, #tpu.memory_space<vmem>>, vector<1x128xf32>
    %26 = vector.broadcast %25 : vector<1x128xf32> to vector<8x128xf32>
    %27 = arith.addf %24, %26 : vector<8x128xf32>
    %cst_25 = arith.constant 0.000000e+00 : f32
    %28 = vector.broadcast %cst_25 : f32 to vector<8x128xf32>
    %29 = arith.maximumf %27, %28 : vector<8x128xf32>
    %c0_26 = arith.constant 0 : index
    %c0_27 = arith.constant 0 : index
    %30 = vector.load %arg11[%c0_26, %c0_27] : memref<128x128xf32, #tpu.memory_space<vmem>>, vector<128x128xf32>
    %cst_28 = arith.constant dense<0.000000e+00> : vector<8x128xf32>
    %31 = tpu.matmul %22, %30, %cst_28 {dimension_numbers = #tpu.dot_dimension_numbers<[1], [0], [0], [1], [0, 0, 1, 1], [], []>} : vector<8x128xf32>, vector<128x128xf32>, vector<8x128xf32> -> vector<8x128xf32>
    %c0_29 = arith.constant 0 : index
    %c0_30 = arith.constant 0 : index
    %32 = vector.load %arg12[%c0_29, %c0_30] : memref<128x128xf32, #tpu.memory_space<vmem>>, vector<128x128xf32>
    %cst_31 = arith.constant dense<0.000000e+00> : vector<8x128xf32>
    %33 = tpu.matmul %29, %32, %cst_31 {dimension_numbers = #tpu.dot_dimension_numbers<[1], [0], [0], [1], [0, 0, 1, 1], [], []>} : vector<8x128xf32>, vector<128x128xf32>, vector<8x128xf32> -> vector<8x128xf32>
    %34 = arith.addf %31, %33 : vector<8x128xf32>
    %c0_32 = arith.constant 0 : index
    %c0_33 = arith.constant 0 : index
    %35 = vector.load %arg13[%c0_32, %c0_33] : memref<1x128xf32, #tpu.memory_space<vmem>>, vector<1x128xf32>
    %36 = vector.broadcast %35 : vector<1x128xf32> to vector<8x128xf32>
    %37 = arith.addf %34, %36 : vector<8x128xf32>
    %c0_34 = arith.constant 0 : index
    %c0_35 = arith.constant 0 : index
    %38 = vector.load %arg14[%c0_34, %c0_35] : memref<8x128xf32, #tpu.memory_space<vmem>>, vector<8x128xf32>
    tpu.vector_store %arg14[%c0_34, %c0_35], %37 {strides = array<i32>} : memref<8x128xf32, #tpu.memory_space<vmem>>, vector<8x128xf32>,
    return
  }
  func.func @transform_0(%arg0: i32) -> (i32, i32) {
    %c0_i32 = arith.constant 0 : i32
    %c0_i32_0 = arith.constant 0 : i32
    return %arg0, %c0_i32 : i32, i32
  }
  func.func @transform_1(%arg0: i32) -> (i32, i32) {
    %c0_i32 = arith.constant 0 : i32
    %c0_i32_0 = arith.constant 0 : i32
    return %arg0, %c0_i32 : i32, i32
  }
  func.func @transform_2(%arg0: i32) -> (i32, i32) {
    %c0_i32 = arith.constant 0 : i32
    %c0_i32_0 = arith.constant 0 : i32
    %c0_i32_1 = arith.constant 0 : i32
    return %c0_i32, %c0_i32_0 : i32, i32
  }
  func.func @transform_3(%arg0: i32) -> (i32, i32) {
    %c0_i32 = arith.constant 0 : i32
    %c0_i32_0 = arith.constant 0 : i32
    %c0_i32_1 = arith.constant 0 : i32
    return %c0_i32, %c0_i32_0 : i32, i32
  }
  func.func @transform_4(%arg0: i32) -> (i32, i32) {
    %c0_i32 = arith.constant 0 : i32
    %c0_i32_0 = arith.constant 0 : i32
    %c0_i32_1 = arith.constant 0 : i32
    return %c0_i32, %c0_i32_0 : i32, i32
  }
  func.func @transform_5(%arg0: i32) -> (i32, i32) {
    %c0_i32 = arith.constant 0 : i32
    %c0_i32_0 = arith.constant 0 : i32
    %c0_i32_1 = arith.constant 0 : i32
    return %c0_i32, %c0_i32_0 : i32, i32
  }
  func.func @transform_6(%arg0: i32) -> (i32, i32) {
    %c0_i32 = arith.constant 0 : i32
    %c0_i32_0 = arith.constant 0 : i32
    %c0_i32_1 = arith.constant 0 : i32
    return %c0_i32, %c0_i32_0 : i32, i32
  }
  func.func @transform_7(%arg0: i32) -> (i32, i32) {
    %c0_i32 = arith.constant 0 : i32
    %c0_i32_0 = arith.constant 0 : i32
    %c0_i32_1 = arith.constant 0 : i32
    return %c0_i32, %c0_i32_0 : i32, i32
  }
  func.func @transform_8(%arg0: i32) -> (i32, i32) {
    %c0_i32 = arith.constant 0 : i32
    %c0_i32_0 = arith.constant 0 : i32
    %c0_i32_1 = arith.constant 0 : i32
    return %c0_i32, %c0_i32_0 : i32, i32
  }
  func.func @transform_9(%arg0: i32) -> (i32, i32) {
    %c0_i32 = arith.constant 0 : i32
    %c0_i32_0 = arith.constant 0 : i32
    %c0_i32_1 = arith.constant 0 : i32
    return %c0_i32, %c0_i32_0 : i32, i32
  }
  func.func @transform_10(%arg0: i32) -> (i32, i32) {
    %c0_i32 = arith.constant 0 : i32
    %c0_i32_0 = arith.constant 0 : i32
    %c0_i32_1 = arith.constant 0 : i32
    return %c0_i32, %c0_i32_0 : i32, i32
  }
  func.func @transform_11(%arg0: i32) -> (i32, i32) {
    %c0_i32 = arith.constant 0 : i32
    %c0_i32_0 = arith.constant 0 : i32
    %c0_i32_1 = arith.constant 0 : i32
    return %c0_i32, %c0_i32_0 : i32, i32
  }
  func.func @transform_12(%arg0: i32) -> (i32, i32) {
    %c0_i32 = arith.constant 0 : i32
    %c0_i32_0 = arith.constant 0 : i32
    %c0_i32_1 = arith.constant 0 : i32
    return %c0_i32, %c0_i32_0 : i32, i32
  }
  func.func @transform_13(%arg0: i32) -> (i32, i32) {
    %c0_i32 = arith.constant 0 : i32
    %c0_i32_0 = arith.constant 0 : i32
    return %arg0, %c0_i32 : i32, i32
  }
}

</mosaic_0001>

<bundles_post_ra>
// kernel: tpu_custom_call.1
= control target key start
LH: loop header
LB: loop body
LE: loop exit
PB: predicated region body
PF: predicated region fallthrough
CT: control target
= control target key end

     0   :  { %18 = vsyncpa [#allocation3], 0  ;;  %s1480_s0 = inlined_call_operand.hbm [shape: f32[8,16], index: 0, kind: input, shape index: {}]   ;;  %s1481_s1 = inlined_call_operand.hbm [shape: f32[8,8], index: 1, kind: input, shape index: {}]   ;;  %s1482_s2 = inlined_call_operand.hbm [shape: f32[16,128], index: 2, kind: input, shape index: {}]   ;;  %s1483_s3 = inlined_call_operand.vmem [shape: f32[1,128], index: 3, kind: input, shape index: {}]   ;;  %s1484_s4 = inlined_call_operand.vmem [shape: f32[8,128], index: 4, kind: input, shape index: {}]   ;;  %s1485_s5 = inlined_call_operand.vmem [shape: f32[1,128], index: 5, kind: input, shape index: {}]   ;;  %s1486_s6 = inlined_call_operand.hbm [shape: f32[128,128], index: 6, kind: input, shape index: {}]   ;;  %s1487_s7 = inlined_call_operand.vmem [shape: f32[1,128], index: 7, kind: input, shape index: {}]   ;;  %s1488_s8 = inlined_call_operand.hbm [shape: f32[128,128], index: 8, kind: input, shape index: {}]   ;;  %s1489_s9 = inlined_call_operand.vmem [shape: f32[1,128], index: 9, kind: input, shape index: {}]   ;;  %s1490_s10 = inlined_call_operand.hbm [shape: f32[128,128], index: 10, kind: input, shape index: {}]   ;;  %s1491_s11 = inlined_call_operand.hbm [shape: f32[128,128], index: 11, kind: input, shape index: {}]   ;;  %s1492_s12 = inlined_call_operand.vmem [shape: f32[1,128], index: 12, kind: input, shape index: {}]   ;;  %s1493_s13 = inlined_call_operand.hbm [shape: f32[8,128], index: 13, kind: output, shape index: {}]  }
   0x1   :  { %19 = vsyncpa [#allocation6], 0 }
   0x2   :  { %20 = vsyncpa [#allocation9], 0 }
   0x3   :  { %21 = vsyncpa [#allocation12], 0 }
   0x4   :  { %22 = vsyncpa [#allocation4], 0  ;;  %s1222_s25 = smov [#allocation5]   ;;  %s1036_s29 = scalar_lea.hbm %s1481_s1, 128 }
   0x5   :  { %s39_s26 = sshll.u32 %s1222_s25, 4  ;;  %p1037_p0 = scmp.ne.s32.totalorder %s1481_s1, %s1036_s29  ;;  %s40_s26 = int_to_ptr.vmem [resolvable:$true] %s39_s26 }
   0x6   :  { %p1040_p1 = scmp.lt.u32.totalorder %s1036_s29, %s1481_s1 }
   0x8   :  { %p1042_p2 = pnand %p1040_p1, %p1037_p0 }
   0xa   :  { %1045 = shalt.err (!%p1042_p2)
}
   0xb   :  { %s1046_s17 = scalar_lea.vmem %s40_s26, 128  ;;  %p1051_p4 = scmp.lt.s32.totalorder %s40_s26, %s40_s26 }
   0xc   :  { %p1047_p3 = scmp.ne.s32.totalorder %s40_s26, %s1046_s17  ;;  %p1052_p5 = scmp.lt.s32.totalorder %s1046_s17, %s1046_s17 }
   0xe   :  { %p1053_p6 = por %p1052_p5, %p1051_p4 }
  0x10   :  { %p1054_p7 = pnand %p1053_p6, %p1047_p3 }
  0x12   :  { %1057 = shalt.err (!%p1054_p7)
}
  0x13   :  { %42 = dma.hbm_to_vmem [thread:$0]  %s1481_s1, 128, %s40_s26, [#allocation6]  }
  0x14   :  { %s1223_s20 = smov [#allocation8]   ;;  %s1224_s22 = smov [#allocation11]  }
  0x15   :  { %s66_s21 = sshll.u32 %s1223_s20, 4  ;;  %s94_s23 = sshll.u32 %s1224_s22, 4  ;;  %s67_s21 = int_to_ptr.vmem [resolvable:$true] %s66_s21  ;;  %s95_s23 = int_to_ptr.vmem [resolvable:$true] %s94_s23 }
  0x16   :  { %s1058_s27 = scalar_lea.hbm %s1486_s6, 2048 }
  0x17   :  { %p1059_p8 = scmp.ne.s32.totalorder %s1486_s6, %s1058_s27  ;;  %p1062_p9 = scmp.lt.u32.totalorder %s1058_s27, %s1486_s6 }
  0x19   :  { %p1064_p10 = pnand %p1062_p9, %p1059_p8 }
  0x1b   :  { %1067 = shalt.err (!%p1064_p10)
}
  0x1c   :  { %s1068_s1 = scalar_lea.vmem %s67_s21, 2048  ;;  %p1073_p12 = scmp.lt.s32.totalorder %s67_s21, %s67_s21 }
  0x1d   :  { %p1069_p11 = scmp.ne.s32.totalorder %s67_s21, %s1068_s1  ;;  %p1074_p13 = scmp.lt.s32.totalorder %s1068_s1, %s1068_s1 }
  0x1f   :  { %p1075_p0 = por %p1074_p13, %p1073_p12 }
  0x21   :  { %p1076_p1 = pnand %p1075_p0, %p1069_p11 }
  0x23   :  { %1079 = shalt.err (!%p1076_p1)
}
  0x24   :  { %s1225_s26 = smov 128   ;;  %s1226_s15 = smov 8  }
  0x25   :  { %72 = dma.hbm_to_vmem [thread:$0]  %s1486_s6, 2048, %s67_s21, [#allocation9], %s1225_s26, %s1225_s26, %s1226_s15  }
  0x26   :  { %s1080_s20 = scalar_lea.hbm %s1490_s10, 2048 }
  0x27   :  { %p1081_p2 = scmp.ne.s32.totalorder %s1490_s10, %s1080_s20  ;;  %p1084_p3 = scmp.lt.u32.totalorder %s1080_s20, %s1490_s10 }
  0x29   :  { %p1086_p4 = pnand %p1084_p3, %p1081_p2 }
  0x2b   :  { %1089 = shalt.err (!%p1086_p4)
}
  0x2c   :  { %s1090_s28 = scalar_lea.vmem %s95_s23, 2048  ;;  %p1095_p6 = scmp.lt.s32.totalorder %s95_s23, %s95_s23 }
  0x2d   :  { %p1091_p5 = scmp.ne.s32.totalorder %s95_s23, %s1090_s28  ;;  %p1096_p7 = scmp.lt.s32.totalorder %s1090_s28, %s1090_s28 }
  0x2f   :  { %p1097_p8 = por %p1096_p7, %p1095_p6 }
  0x31   :  { %p1098_p9 = pnand %p1097_p8, %p1091_p5 }
  0x33   :  { %1101 = shalt.err (!%p1098_p9)
}
  0x34   :  { %100 = dma.hbm_to_vmem [thread:$0]  %s1490_s10, 2048, %s95_s23, [#allocation12], %s1225_s26, %s1225_s26, %s1226_s15  }
  0x35   :  { %s1227_s29 = smov [#allocation2]   ;;  %s1228_s14 = smov [#allocation7]  }
  0x36   :  { %s29_s30 = sshll.u32 %s1227_s29, 4  ;;  %s48_s1 = sshll.u32 %s1228_s14, 4  ;;  %s30_s30 = int_to_ptr.vmem [resolvable:$true] %s29_s30  ;;  %s49_s1 = int_to_ptr.vmem [resolvable:$true] %s48_s1 }
  0x37   :  { %s1102_s18 = scalar_lea.hbm %s1480_s0, 128 }
  0x38   :  { %p1103_p10 = scmp.ne.s32.totalorder %s1480_s0, %s1102_s18  ;;  %p1106_p11 = scmp.lt.u32.totalorder %s1102_s18, %s1480_s0 }
  0x3a   :  { %p1108_p12 = pnand %p1106_p11, %p1103_p10 }
  0x3c   :  { %1111 = shalt.err (!%p1108_p12)
}
  0x3d   :  { %s1112_s10 = scalar_lea.vmem %s30_s30, 128  ;;  %p1117_p0 = scmp.lt.s32.totalorder %s30_s30, %s30_s30 }
  0x3e   :  { %p1113_p13 = scmp.ne.s32.totalorder %s30_s30, %s1112_s10  ;;  %p1118_p1 = scmp.lt.s32.totalorder %s1112_s10, %s1112_s10 }
  0x40   :  { %p1119_p2 = por %p1118_p1, %p1117_p0 }
  0x42   :  { %p1120_p3 = pnand %p1119_p2, %p1113_p13 }
  0x44   :  { %1123 = shalt.err (!%p1120_p3)
}
  0x45   :  { %32 = dma.hbm_to_vmem [thread:$0]  %s1480_s0, 128, %s30_s30, [#allocation3]  }
  0x46   :  { %s1124_s6 = scalar_lea.hbm %s1482_s2, 256 }
  0x47   :  { %p1125_p4 = scmp.ne.s32.totalorder %s1482_s2, %s1124_s6  ;;  %p1128_p5 = scmp.lt.u32.totalorder %s1124_s6, %s1482_s2 }
  0x49   :  { %p1130_p6 = pnand %p1128_p5, %p1125_p4 }
  0x4b   :  { %1133 = shalt.err (!%p1130_p6)
}
  0x4c   :  { %s1134_s17 = scalar_lea.vmem %s49_s1, 256  ;;  %p1139_p8 = scmp.lt.s32.totalorder %s49_s1, %s49_s1 }
  0x4d   :  { %p1135_p7 = scmp.ne.s32.totalorder %s49_s1, %s1134_s17  ;;  %p1140_p9 = scmp.lt.s32.totalorder %s1134_s17, %s1134_s17 }
  0x4f   :  { %p1141_p10 = por %p1140_p9, %p1139_p8 }
  0x51   :  { %p1142_p11 = pnand %p1141_p10, %p1135_p7 }
  0x53   :  { %1145 = shalt.err (!%p1142_p11)
}
  0x54   :  { %54 = dma.hbm_to_vmem [thread:$0]  %s1482_s2, 256, %s49_s1, [#allocation6], %s1225_s26, %s1225_s26, %s1226_s15  }
  0x55   :  { %s1229_s18 = smov [#allocation10]   ;;  %s1230_s20 = smov [#allocation13]  }
  0x56   :  { %s80_s19 = sshll.u32 %s1229_s18, 4  ;;  %s106_s22 = sshll.u32 %s1230_s20, 4  ;;  %s81_s19 = int_to_ptr.vmem [resolvable:$true] %s80_s19  ;;  %s107_s22 = int_to_ptr.vmem [resolvable:$true] %s106_s22 }
  0x57   :  { %s1146_s23 = scalar_lea.hbm %s1488_s8, 2048 }
  0x58   :  { %p1147_p12 = scmp.ne.s32.totalorder %s1488_s8, %s1146_s23  ;;  %p1150_p13 = scmp.lt.u32.totalorder %s1146_s23, %s1488_s8 }
  0x5a   :  { %p1152_p0 = pnand %p1150_p13, %p1147_p12 }
  0x5c   :  { %1155 = shalt.err (!%p1152_p0)
}
  0x5d   :  { %s1156_s2 = scalar_lea.vmem %s81_s19, 2048  ;;  %p1161_p2 = scmp.lt.s32.totalorder %s81_s19, %s81_s19 }
  0x5e   :  { %p1157_p1 = scmp.ne.s32.totalorder %s81_s19, %s1156_s2  ;;  %p1162_p3 = scmp.lt.s32.totalorder %s1156_s2, %s1156_s2 }
  0x60   :  { %p1163_p4 = por %p1162_p3, %p1161_p2 }
  0x62   :  { %p1164_p5 = pnand %p1163_p4, %p1157_p1 }
  0x64   :  { %1167 = shalt.err (!%p1164_p5)
}
  0x65   :  { %86 = dma.hbm_to_vmem [thread:$0]  %s1488_s8, 2048, %s81_s19, [#allocation9], %s1225_s26, %s1225_s26, %s1226_s15  }
  0x66   :  { %s1168_s16 = scalar_lea.hbm %s1491_s11, 2048 }
  0x67   :  { %p1169_p6 = scmp.ne.s32.totalorder %s1491_s11, %s1168_s16  ;;  %p1172_p7 = scmp.lt.u32.totalorder %s1168_s16, %s1491_s11 }
  0x69   :  { %p1174_p8 = pnand %p1172_p7, %p1169_p6 }
  0x6b   :  { %1177 = shalt.err (!%p1174_p8)
}
  0x6c   :  { %s1178_s20 = scalar_lea.vmem %s107_s22, 2048  ;;  %p1183_p10 = scmp.lt.s32.totalorder %s107_s22, %s107_s22 }
  0x6d   :  { %p1179_p9 = scmp.ne.s32.totalorder %s107_s22, %s1178_s20  ;;  %p1184_p11 = scmp.lt.s32.totalorder %s1178_s20, %s1178_s20 }
  0x6f   :  { %p1185_p12 = por %p1184_p11, %p1183_p10 }
  0x71   :  { %p1186_p13 = pnand %p1185_p12, %p1179_p9 }
  0x73   :  { %1189 = shalt.err (!%p1186_p13)
}
  0x74   :  { %112 = dma.hbm_to_vmem [thread:$0]  %s1491_s11, 2048, %s107_s22, [#allocation12], %s1225_s26, %s1225_s26, %s1226_s15  }
  0x75   :  { %1212 = dma.done.wait [#allocation3], 128  }
  0x76   :  { %1213 = vsyncadd [#allocation3], 4294967168 }
  0x77   :  { %1214 = dma.done.wait [#allocation6], 384  }
  0x78   :  { %1215 = vsyncadd [#allocation6], 4294966912 }
  0x79   :  { %1216 = dma.done.wait [#allocation9], 4096  }
  0x7a   :  { %1217 = vsyncadd [#allocation9], 4294963200 }
  0x7b   :  { %1218 = dma.done.wait [#allocation12], 4096  }
  0x7c   :  { %1219 = vsyncadd [#allocation12], 4294963200  ;;  %v1231_v0 = vmov 0.0|0.0   ;;  %v1232_v1 = vmov 0.0   ;;  %vm1233_vm0 = vmmov 0   ;;  %vm230_vm1 = vcmask 64512  }
  0x7d   :  { %924 = vmatprep.subr.bf16.mxu0 %v1231_v0  ;;  %779 = vmatprep.subr.mxu1 %v1232_v1  ;;  %v137_v2 = vld [vmem:[#allocation7] sm:$0xff]  ;;  %v138_v3 = vld [vmem:[#allocation7 + $0x8] sm:$0xff]  ;;  %v222_v4 = vld [vmem:[%s1484_s4] sm:$0xff]  ;;  %vm146_vm2 = vcmask 130048  }
  0x7e   :  { %781 = vmatprep.mubr.msk.f32.mxu1 %vm1233_vm0, %v1232_v1  ;;  %776 = vmatprep.mubr.msk.f32.mxu0 %vm1233_vm0, %v1232_v1  ;;  %v925_v5 = vpack.c.bf16 %v138_v3, %v137_v2  ;;  %v221_v6 = vld [vmem:[#allocation5] sm:$0xff]  ;;  %v399_v7 = vld [vmem:[#allocation10] sm:$0xff]  ;;  %v307_v14 = vld [vmem:[#allocation8 + $0x10] sm:$0xff] }
  0x7f   :  { %780 = vmatpush3.msra.mxu1 %v222_v4  ;;  %v400_v8 = vld [vmem:[#allocation10 + $0x8] sm:$0xff]  ;;  %v305_v9 = vld [vmem:[#allocation8] sm:$0xff]  ;;  %v401_v15 = vld [vmem:[#allocation10 + $0x10] sm:$0xff] }
  0x80   :  { %782 = vmatmul.mubr.msk.f32.vlgmr.msra.gmra.mrb[0].mxu1 %vm230_vm1, %v221_v6  ;;  %927 = vmatprep.subr.bf16.mxu1 %v1231_v0  ;;  %v306_v10 = vld [vmem:[#allocation8 + $0x8] sm:$0xff]  ;;  %v136_v11 = vld [vmem:[#allocation2] sm:$0xff]  ;;  %v952_v12 = vpack.c.bf16 %v400_v8, %v399_v7  ;;  %v402_v16 = vld [vmem:[#allocation10 + $0x18] sm:$0xff] }
  0x81   :  { %926 = vmatpush3.bf16.msra.mxu0 %v925_v5  ;;  %v928_v13 = vpack.c.bf16 %v306_v10, %v305_v9  ;;  %816 = vmatprep.mubr.msk.f32.mxu1 %vm1233_vm0, %v1232_v1  ;;  %v308_v17 = vld [vmem:[#allocation8 + $0x18] sm:$0xff]  ;;  %v309_v19 = vld [vmem:[#allocation8 + $0x20] sm:$0xff]  ;;  %v310_v20 = vld [vmem:[#allocation8 + $0x28] sm:$0xff]  ;;  %v955_v21 = vpack.c.bf16 %v402_v16, %v401_v15 }
  0x82   :  { %951 = vmatprep.subr.bf16.mxu0 %v1231_v0  ;;  %v931_v18 = vpack.c.bf16 %v308_v17, %v307_v14  ;;  %v403_v22 = vld [vmem:[#allocation10 + $0x20] sm:$0xff]  ;;  %v404_v23 = vld [vmem:[#allocation10 + $0x28] sm:$0xff]  ;;  %v934_v24 = vpack.c.bf16 %v310_v20, %v309_v19  ;;  %v311_v25 = vld [vmem:[#allocation8 + $0x30] sm:$0xff] }
  0x83   :  { %929 = vmatpush3.bf16.msra.mxu1 %v928_v13  ;;  %v312_v26 = vld [vmem:[#allocation8 + $0x38] sm:$0xff]  ;;  %v958_v27 = vpack.c.bf16 %v404_v23, %v403_v22  ;;  %v405_v28 = vld [vmem:[#allocation10 + $0x30] sm:$0xff]  ;;  %v313_v31 = vld [vmem:[#allocation8 + $0x40] sm:$0xff] }
  0x84   :  { %777 = vmatmul.mubr.msk.f32.vlgmr.msra.gmra.mrb[0].mxu0 %vm146_vm2, %v136_v11  ;;  %930 = vmatprep.subr.bf16.mxu1 %v1231_v0  ;;  %v406_v29 = vld [vmem:[#allocation10 + $0x38] sm:$0xff]  ;;  %v937_v30 = vpack.c.bf16 %v312_v26, %v311_v25  ;;  %v314_v32 = vld [vmem:[#allocation8 + $0x48] sm:$0xff]  ;;  %v407_v34 = vld [vmem:[#allocation10 + $0x40] sm:$0xff] }
  0x85   :  { %953 = vmatpush3.bf16.msra.mxu0 %v952_v12  ;;  %851 = vmatprep.mubr.msk.f32.mxu0 %vm1233_vm0, %v1232_v1  ;;  %v961_v33 = vpack.c.bf16 %v406_v29, %v405_v28  ;;  %v408_v35 = vld [vmem:[#allocation10 + $0x48] sm:$0xff]  ;;  %v940_v36 = vpack.c.bf16 %v314_v32, %v313_v31  ;;  %v315_v37 = vld [vmem:[#allocation8 + $0x50] sm:$0xff]  ;;  %v316_v38 = vld [vmem:[#allocation8 + $0x58] sm:$0xff] }
  0x86   :  { %954 = vmatprep.subr.bf16.mxu0 %v1231_v0  ;;  %v964_v39 = vpack.c.bf16 %v408_v35, %v407_v34  ;;  %v409_v40 = vld [vmem:[#allocation10 + $0x50] sm:$0xff]  ;;  %v410_v41 = vld [vmem:[#allocation10 + $0x58] sm:$0xff]  ;;  %v943_v42 = vpack.c.bf16 %v316_v38, %v315_v37  ;;  %v317_v43 = vld [vmem:[#allocation8 + $0x60] sm:$0xff] }
  0x87   :  { %932 = vmatpush3.bf16.msra.mxu1 %v931_v18  ;;  %v318_v44 = vld [vmem:[#allocation8 + $0x68] sm:$0xff]  ;;  %v967_v45 = vpack.c.bf16 %v410_v41, %v409_v40  ;;  %v411_v46 = vld [vmem:[#allocation10 + $0x60] sm:$0xff]  ;;  %v413_v50 = vld [vmem:[#allocation10 + $0x70] sm:$0xff] }
  0x88   :  { %933 = vmatprep.subr.bf16.mxu1 %v1231_v0  ;;  %v412_v47 = vld [vmem:[#allocation10 + $0x68] sm:$0xff]  ;;  %v946_v48 = vpack.c.bf16 %v318_v44, %v317_v43  ;;  %v414_v51 = vld [vmem:[#allocation10 + $0x78] sm:$0xff]  ;;  %v319_v53 = vld [vmem:[#allocation8 + $0x70] sm:$0xff] }
  0x89   :  { %956 = vmatpush3.bf16.msra.mxu0 %v955_v21  ;;  %v970_v49 = vpack.c.bf16 %v412_v47, %v411_v46  ;;  %v973_v52 = vpack.c.bf16 %v414_v51, %v413_v50  ;;  %v320_v54 = vld [vmem:[#allocation8 + $0x78] sm:$0xff]  ;;  %v694_v56 = vld [vmem:[%s1485_s5] ss:$0 sm:$0xff]  ;;  %v494_v58 = vld [vmem:[#allocation11 + $0x8] sm:$0xff] }
  0x8a   :  { %957 = vmatprep.subr.bf16.mxu0 %v1231_v0  ;;  %v949_v55 = vpack.c.bf16 %v320_v54, %v319_v53  ;;  %v493_v57 = vld [vmem:[#allocation11] sm:$0xff]  ;;  %v510_v4 = vld [vmem:[#allocation13 + $0x8] sm:$0xff]  ;;  %v495_v5 = vld [vmem:[#allocation11 + $0x10] sm:$0xff] }
  0x8b   :  { %935 = vmatpush3.bf16.msra.mxu1 %v934_v24  ;;  %v692_v62 = vld [vmem:[%s1483_s3] ss:$0 sm:$0xff]  ;;  %v1000_v2 = vpack.c.bf16 %v494_v58, %v493_v57  ;;  %v496_v6 = vld [vmem:[#allocation11 + $0x18] sm:$0xff]  ;;  %v511_v11 = vld [vmem:[#allocation13 + $0x10] sm:$0xff] }
  0x8c   :  { %936 = vmatprep.subr.bf16.mxu1 %v1231_v0  ;;  %v509_v63 = vld [vmem:[#allocation13] sm:$0xff]  ;;  %v1003_v12 = vpack.c.bf16 %v496_v6, %v495_v5  ;;  %v512_v14 = vld [vmem:[#allocation13 + $0x18] sm:$0xff]  ;;  %v498_v16 = vld [vmem:[#allocation11 + $0x28] sm:$0xff] }
  0x8d   :  { %959 = vmatpush3.bf16.msra.mxu0 %v958_v27  ;;  %v976_v10 = vpack.c.bf16 %v510_v4, %v509_v63  ;;  %v497_v15 = vld [vmem:[#allocation11 + $0x20] sm:$0xff]  ;;  %v979_v17 = vpack.c.bf16 %v512_v14, %v511_v11  ;;  %v514_v20 = vld [vmem:[#allocation13 + $0x28] sm:$0xff]  ;;  %v499_v21 = vld [vmem:[#allocation11 + $0x30] sm:$0xff] }
  0x8e   :  { %960 = vmatprep.subr.bf16.mxu0 %v1231_v0  ;;  %v513_v18 = vld [vmem:[#allocation13 + $0x20] sm:$0xff]  ;;  %v1006_v19 = vpack.c.bf16 %v498_v16, %v497_v15  ;;  %v500_v22 = vld [vmem:[#allocation11 + $0x38] sm:$0xff]  ;;  %v515_v24 = vld [vmem:[#allocation13 + $0x30] sm:$0xff] }
  0x8f   :  { %938 = vmatpush3.bf16.msra.mxu1 %v937_v30  ;;  %v982_v23 = vpack.c.bf16 %v514_v20, %v513_v18  ;;  %v1009_v25 = vpack.c.bf16 %v500_v22, %v499_v21  ;;  %v516_v26 = vld [vmem:[#allocation13 + $0x38] sm:$0xff]  ;;  %v501_v27 = vld [vmem:[#allocation11 + $0x40] sm:$0xff]  ;;  %v502_v28 = vld [vmem:[#allocation11 + $0x48] sm:$0xff] }
  0x90   :  { %939 = vmatprep.subr.bf16.mxu1 %v1231_v0  ;;  %v985_v29 = vpack.c.bf16 %v516_v26, %v515_v24  ;;  %v517_v30 = vld [vmem:[#allocation13 + $0x40] sm:$0xff]  ;;  %v1012_v31 = vpack.c.bf16 %v502_v28, %v501_v27  ;;  %v503_v32 = vld [vmem:[#allocation11 + $0x50] sm:$0xff]  ;;  %v520_v37 = vld [vmem:[#allocation13 + $0x58] sm:$0xff] }
  0x91   :  { %962 = vmatpush3.bf16.msra.mxu0 %v961_v33  ;;  %v504_v33 = vld [vmem:[#allocation11 + $0x58] sm:$0xff]  ;;  %v519_v35 = vld [vmem:[#allocation13 + $0x50] sm:$0xff]  ;;  %v505_v38 = vld [vmem:[#allocation11 + $0x60] sm:$0xff] }
  0x92   :  { %963 = vmatprep.subr.bf16.mxu0 %v1231_v0  ;;  %v991_v40 = vpack.c.bf16 %v520_v37, %v519_v35  ;;  %v522_v43 = vld [vmem:[#allocation13 + $0x68] sm:$0xff]  ;;  %v524_v46 = vld [vmem:[#allocation13 + $0x78] sm:$0xff]  ;;  %v697_v51 = vld [vmem:[%s1489_s9] ss:$0 sm:$0xff]  ;;  %s1234_s9 = smov [#allocation14]  }
  0x93   :  { %941 = vmatpush3.bf16.msra.mxu1 %v940_v36  ;;  %v1015_v36 = vpack.c.bf16 %v504_v33, %v503_v32  ;;  %v698_v63 = vld [vmem:[%s1492_s12] ss:$0 sm:$0xff]  ;;  %s680_s28 = sshll.u32 %s1234_s9, 4  ;;  %s681_s28 = int_to_ptr.vmem [resolvable:$true] %s680_s28 }
  0x94   :  { %942 = vmatprep.subr.bf16.mxu1 %v1231_v0  ;;  %p1195_p1 = scmp.lt.s32.totalorder %s681_s28, %s681_s28 }
  0x95   :  { %965 = vmatpush3.bf16.msra.mxu0 %v964_v39  ;;  %v506_v39 = vld [vmem:[#allocation11 + $0x68] sm:$0xff] }
  0x96   :  { %966 = vmatprep.subr.bf16.mxu0 %v1231_v0  ;;  %v1018_v41 = vpack.c.bf16 %v506_v39, %v505_v38 }
  0x97   :  { %944 = vmatpush3.bf16.msra.mxu1 %v943_v42  ;;  %v521_v42 = vld [vmem:[#allocation13 + $0x60] sm:$0xff] }
  0x98   :  { %945 = vmatprep.subr.bf16.mxu1 %v1231_v0  ;;  %v994_v44 = vpack.c.bf16 %v522_v43, %v521_v42 }
  0x99   :  { %968 = vmatpush3.bf16.msra.mxu0 %v967_v45  ;;  %v523_v45 = vld [vmem:[#allocation13 + $0x70] sm:$0xff] }
  0x9a   :  { %969 = vmatprep.subr.bf16.mxu0 %v1231_v0  ;;  %v997_v47 = vpack.c.bf16 %v524_v46, %v523_v45 }
  0x9b   :  { %947 = vmatpush3.bf16.msra.mxu1 %v946_v48  ;;  %v507_v48 = vld [vmem:[#allocation11 + $0x70] sm:$0xff] }
  0x9c   :  { %948 = vmatprep.subr.bf16.mxu1 %v1231_v0 }
  0x9d   :  { %971 = vmatpush3.bf16.msra.mxu0 %v970_v49  ;;  %v508_v49 = vld [vmem:[#allocation11 + $0x78] sm:$0xff] }
  0x9e   :  { %972 = vmatprep.subr.bf16.mxu0 %v1231_v0  ;;  %v1021_v50 = vpack.c.bf16 %v508_v49, %v507_v48 }
  0x9f   :  { %950 = vmatpush3.bf16.msra.mxu1 %v949_v55  ;;  %v696_v55 = vld [vmem:[%s1487_s7] ss:$0 sm:$0xff]  ;;  %s1190_s7 = scalar_lea.vmem %s681_s28, 128 }
  0xa0   :  { %975 = vmatprep.subr.bf16.mxu1 %v1231_v0  ;;  %p1191_p0 = scmp.ne.s32.totalorder %s681_s28, %s1190_s7  ;;  %p1196_p2 = scmp.lt.s32.totalorder %s1190_s7, %s1190_s7 }
  0xa1   :  { %974 = vmatpush3.bf16.msra.mxu0 %v973_v52 }
  0xa2   :  { %999 = vmatprep.subr.bf16.mxu0 %v1231_v0  ;;  %p1197_p3 = por %p1196_p2, %p1195_p1 }
  0xa4   :  { %p1198_p4 = pnand %p1197_p3, %p1191_p0 }
 0x153   :  { %v300_v59 = vpop.f32.mrb[0].mxu1 }
 0x154   :  { %v301_v60 = vadd.f32 %v694_v56, %v300_v59  ;;  %v783_v61 = vpop.f32.mrb[1].mxu1 }
 0x156   :  { %v304_v3 = vmax.f32 %v301_v60, 0.0 }
 0x157   :  { %v216_v7 = vpop.f32.mrb[0].mxu0 }
 0x158   :  { %v217_v8 = vadd.f32 %v692_v62, %v216_v7  ;;  %v778_v9 = vpop.f32.mrb[1].mxu0  ;;  %852 = vmatmul.mubr.f32.vlgmr.msra.gmra.mrb[2].mxu0 %v304_v3 }
 0x159   :  { %1001 = vmatpush3.bf16.msra.mxu0 %v1000_v2  ;;  %921 = vmatprep.mubr.msk.f32.mxu0 %vm1233_vm0, %v1232_v1 }
 0x15a   :  { %v220_v13 = vmax.f32 %v217_v8, 0.0  ;;  %1002 = vmatprep.subr.bf16.mxu0 %v1231_v0 }
 0x15c   :  { %817 = vmatmul.mubr.f32.vlgmr.msra.gmra.mrb[2].mxu1 %v220_v13 }
 0x15d   :  { %977 = vmatpush3.bf16.msra.mxu1 %v976_v10  ;;  %1004 = vmatpush3.bf16.msra.mxu0 %v1003_v12 }
 0x15e   :  { %978 = vmatprep.subr.bf16.mxu1 %v1231_v0  ;;  %1005 = vmatprep.subr.bf16.mxu0 %v1231_v0 }
 0x15f   :  { %886 = vmatprep.mubr.msk.f32.mxu1 %vm1233_vm0, %v1232_v1  ;;  %v518_v1 = vld [vmem:[#allocation13 + $0x48] sm:$0xff] }
 0x160   :  { %v988_v34 = vpack.c.bf16 %v518_v1, %v517_v30 }
 0x161   :  { %980 = vmatpush3.bf16.msra.mxu1 %v979_v17  ;;  %1007 = vmatpush3.bf16.msra.mxu0 %v1006_v19 }
 0x162   :  { %981 = vmatprep.subr.bf16.mxu1 %v1231_v0  ;;  %1008 = vmatprep.subr.bf16.mxu0 %v1231_v0 }
 0x165   :  { %983 = vmatpush3.bf16.msra.mxu1 %v982_v23  ;;  %1010 = vmatpush3.bf16.msra.mxu0 %v1009_v25 }
 0x166   :  { %984 = vmatprep.subr.bf16.mxu1 %v1231_v0  ;;  %1011 = vmatprep.subr.bf16.mxu0 %v1231_v0 }
 0x169   :  { %986 = vmatpush3.bf16.msra.mxu1 %v985_v29  ;;  %1013 = vmatpush3.bf16.msra.mxu0 %v1012_v31 }
 0x16a   :  { %987 = vmatprep.subr.bf16.mxu1 %v1231_v0  ;;  %1014 = vmatprep.subr.bf16.mxu0 %v1231_v0 }
 0x16d   :  { %989 = vmatpush3.bf16.msra.mxu1 %v988_v34  ;;  %1016 = vmatpush3.bf16.msra.mxu0 %v1015_v36 }
 0x16e   :  { %990 = vmatprep.subr.bf16.mxu1 %v1231_v0  ;;  %1017 = vmatprep.subr.bf16.mxu0 %v1231_v0 }
 0x171   :  { %992 = vmatpush3.bf16.msra.mxu1 %v991_v40  ;;  %1019 = vmatpush3.bf16.msra.mxu0 %v1018_v41 }
 0x172   :  { %993 = vmatprep.subr.bf16.mxu1 %v1231_v0  ;;  %1020 = vmatprep.subr.bf16.mxu0 %v1231_v0 }
 0x175   :  { %995 = vmatpush3.bf16.msra.mxu1 %v994_v44  ;;  %1022 = vmatpush3.bf16.msra.mxu0 %v1021_v50 }
 0x176   :  { %996 = vmatprep.subr.bf16.mxu1 %v1231_v0 }
 0x179   :  { %998 = vmatpush3.bf16.msra.mxu1 %v997_v47 }
 0x22b   :  { %v488_v52 = vpop.f32.mrb[2].mxu0 }
 0x22c   :  { %v489_v53 = vadd.f32 %v697_v51, %v488_v52  ;;  %v853_v54 = vpop.f32.mrb[3].mxu0 }
 0x22e   :  { %v492_v0 = vmax.f32 %v489_v53, 0.0 }
 0x22f   :  { %v394_v56 = vpop.f32.mrb[2].mxu1 }
 0x230   :  { %v395_v57 = vadd.f32 %v696_v55, %v394_v56  ;;  %v818_v58 = vpop.f32.mrb[3].mxu1  ;;  %887 = vmatmul.mubr.f32.vlgmr.msra.gmra.mrb[4].mxu1 %v492_v0 }
 0x232   :  { %v398_v59 = vmax.f32 %v395_v57, 0.0 }
 0x234   :  { %922 = vmatmul.mubr.f32.vlgmr.msra.gmra.mrb[4].mxu0 %v398_v59 }
 0x303   :  { %v591_v60 = vpop.f32.mrb[4].mxu1 }
 0x304   :  { %v888_v61 = vpop.f32.mrb[5].mxu1 }
 0x307   :  { %v661_v62 = vpop.f32.mrb[4].mxu0 }
 0x308   :  { %v662_v2 = vadd.f32 %v661_v62, %v591_v60  ;;  %v923_v3 = vpop.f32.mrb[5].mxu0 }
 0x30a   :  { %v672_v4 = vadd.f32 %v698_v63, %v662_v2 }
 0x30c   :  { %673 = vst [vmem:[#allocation14] sm:$0xff] %v672_v4 }
 0x30d   :  { %1201 = shalt.err (!%p1198_p4)
}
 0x30e   :  { %s1202_s1 = scalar_lea.hbm %s1493_s13, 128 }
 0x30f   :  { %p1203_p5 = scmp.ne.s32.totalorder %s1493_s13, %s1202_s1  ;;  %p1206_p6 = scmp.lt.u32.totalorder %s1202_s1, %s1493_s13 }
 0x311   :  { %p1208_p7 = pnand %p1206_p6, %p1203_p5 }
 0x313   :  { %1211 = shalt.err (!%p1208_p7)
}
 0x314   :  { %683 = dma.vmem_to_hbm [thread:$0]  %s681_s28, 128, %s1493_s13, [#allocation4]  }
 0x315   :  { %1220 = dma.done.wait [#allocation4], 128  }
 0x316   :  { %1221 = vsyncadd [#allocation4], 4294967168 }
 0x317   :  { %687 = vsyncpa [#allocation3], 1 }
 0x318   :  { %688 = vsyncpa [#allocation6], 1 }
 0x319   :  { %689 = vsyncpa [#allocation9], 1 }
 0x31a   :  { %690 = vsyncpa [#allocation12], 1 }
 0x31b   :  { %691 = vsyncpa [#allocation4], 1 }

</bundles_post_ra>
